<compile_context>
chip_gen: v7x
topology: tpu7x:2x2x1
jax: 0.10.0
libtpu: 0.0.40
codegen_flags: <defaults>
</compile_context>

<pallas_src>
import functools

import jax
import jax.numpy as jnp
from jax.experimental import pallas as pl
from jax.experimental.pallas import tpu as pltpu


# ---------------------------------------------------------------------------
# Hardware-aware sizing helpers
# ---------------------------------------------------------------------------
def _vmem_capacity_bytes():
    """Physical VMEM per core; falls back to v5e/v6e's 128 MiB."""
    try:
        info = pltpu.get_tpu_info()
        cap = int(getattr(info, "vmem_capacity_bytes", 0))
        if cap > 0:
            return cap
    except Exception:
        pass
    return 128 << 20


def _vmem_limit_bytes(footprint_bytes, cap):
    """Scoped-VMEM limit: footprint + headroom, never above ~3/4 physical."""
    want = int(footprint_bytes) + (8 << 20)
    return int(min(max(want, 32 << 20), (cap * 3) // 4))


def _pick_hw_tile(hw, c, itemsize, block_bytes):
    """Lane (H*W) tile for a (C, t_hw) block under a per-block byte budget.

    Keeps >= 512 lanes per DMA row (long strided rows keep HBM at peak BW even
    for very large C; the VMEM limit is raised from the actual footprint
    instead of shrinking the tile). Falls back to the full lane extent when it
    already fits (always a legal block shape)."""
    lanes = block_bytes // max(c * itemsize, 1)
    lanes = max(lanes, 512)
    t = (lanes // 128) * 128
    if t >= hw:
        return hw
    return t


def _x_block_spec(c, t_hw, n_buffers=2):
    """(C, t_hw) input block; optionally deeper pipelining for pure streaming."""
    index_map = lambda i, j: (i, 0, j)
    if n_buffers != 2 and hasattr(pl, "Buffered"):
        try:
            return pl.BlockSpec((None, c, t_hw), index_map,
                                pipeline_mode=pl.Buffered(n_buffers))
        except TypeError:  # older jax without pipeline_mode on BlockSpec
            pass
    return pl.BlockSpec((None, c, t_hw), index_map)


# ---------------------------------------------------------------------------
# Kernel 1 (tiled path): per-(sample, hw-tile) partial sum / sum-of-squares
# ---------------------------------------------------------------------------
def _bn_stats_kernel(x_ref, sum_ref, sq_ref, *, hw, t_hw, mask_tail):
    x = x_ref[...].astype(jnp.float32)                        # (C, t_hw)
    if mask_tail:
        j = pl.program_id(1)
        col = jax.lax.broadcasted_iota(jnp.int32, x.shape, 1) + j * t_hw
        x = jnp.where(col < hw, x, 0.0)                       # zero the OOB tail
    sum_ref[...] = jnp.sum(x, axis=-1, keepdims=True)         # (C, 1)
    sq_ref[...] = jnp.sum(x * x, axis=-1, keepdims=True)      # (C, 1)


# ---------------------------------------------------------------------------
# Kernel 2 (tiled path): elementwise normalize, pre-folded single FMA
# ---------------------------------------------------------------------------
def _bn_norm_kernel(x_ref, scale_ref, shift_ref, out_ref):
    x = x_ref[...].astype(jnp.float32)                        # (C, t_hw)
    out_ref[...] = (x * scale_ref[...] + shift_ref[...]).astype(out_ref.dtype)


# ---------------------------------------------------------------------------
# Kernel 3 (fused path): whole activation resident in VMEM -> 2 HBM passes
# ---------------------------------------------------------------------------
def _bn_fused_kernel(x_ref, g_ref, b_ref, out_ref, mean_ref, var_ref, *,
                     inv_m, eps):
    x = x_ref[...].astype(jnp.float32)                        # (N, C, HW)
    s = jnp.sum(jnp.sum(x, axis=2, keepdims=True), axis=0)    # (C, 1)
    sq = jnp.sum(jnp.sum(x * x, axis=2, keepdims=True), axis=0)
    mean = s * inv_m
    var = jnp.maximum(sq * inv_m - mean * mean, 0.0)          # clamp cancellation
    mean_ref[...] = mean
    var_ref[...] = var
    scale = g_ref[...] * jax.lax.rsqrt(var + eps)
    shift = b_ref[...] - mean * scale
    out_ref[...] = (x * scale[None, :, :]
                    + shift[None, :, :]).astype(out_ref.dtype)


# ---------------------------------------------------------------------------
# pallas_call wrappers
# ---------------------------------------------------------------------------
def _batchnorm_stats(x3d, t_hw, cap):
    n, c, hw = x3d.shape
    itemsize = jnp.dtype(x3d.dtype).itemsize
    n_hw = pl.cdiv(hw, t_hw)
    mask_tail = (hw % t_hw) != 0
    kernel = functools.partial(_bn_stats_kernel, hw=hw, t_hw=t_hw,
                               mask_tail=mask_tail)
    block_bytes = c * t_hw * itemsize
    footprint = 3 * block_bytes + 4 * (c * 4)                # 3x in bufs + outs
    return pl.pallas_call(
        kernel,
        out_shape=(jax.ShapeDtypeStruct((n, n_hw, c, 1), jnp.float32),
                   jax.ShapeDtypeStruct((n, n_hw, c, 1), jnp.float32)),
        grid_spec=pltpu.PrefetchScalarGridSpec(
            num_scalar_prefetch=0,
            grid=(n, n_hw),
            in_specs=[_x_block_spec(c, t_hw, n_buffers=3)],
            out_specs=[pl.BlockSpec((None, None, c, 1),
                                    lambda i, j: (i, j, 0, 0)),
                       pl.BlockSpec((None, None, c, 1),
                                    lambda i, j: (i, j, 0, 0))],
        ),
        compiler_params=pltpu.CompilerParams(
            dimension_semantics=("parallel", "parallel"),
            vmem_limit_bytes=_vmem_limit_bytes(footprint, cap)),
        cost_estimate=pl.CostEstimate(
            flops=int(3 * n * c * hw),
            transcendentals=0,
            bytes_accessed=int(n * c * hw * itemsize + 2 * n * n_hw * c * 4)),
    )(x3d)


def _batchnorm_normalize(x3d, scale, shift, t_hw, cap):
    n, c, hw = x3d.shape
    itemsize = jnp.dtype(x3d.dtype).itemsize
    n_hw = pl.cdiv(hw, t_hw)
    block_bytes = c * t_hw * itemsize
    footprint = 4 * block_bytes + 4 * (c * 4)                # 2x in + 2x out
    return pl.pallas_call(
        _bn_norm_kernel,
        out_shape=jax.ShapeDtypeStruct((n, c, hw), x3d.dtype),
        grid_spec=pltpu.PrefetchScalarGridSpec(
            num_scalar_prefetch=0,
            grid=(n, n_hw),
            in_specs=[_x_block_spec(c, t_hw),
                      pl.BlockSpec((c, 1), lambda i, j: (0, 0)),
                      pl.BlockSpec((c, 1), lambda i, j: (0, 0))],
            out_specs=pl.BlockSpec((None, c, t_hw), lambda i, j: (i, 0, j)),
        ),
        compiler_params=pltpu.CompilerParams(
            dimension_semantics=("parallel", "parallel"),
            vmem_limit_bytes=_vmem_limit_bytes(footprint, cap)),
        cost_estimate=pl.CostEstimate(
            flops=int(2 * n * c * hw),
            transcendentals=0,
            bytes_accessed=int(2 * n * c * hw * itemsize)),
    )(x3d, scale, shift)


def _batchnorm_fused(x3d, g2, b2, eps, cap):
    n, c, hw = x3d.shape
    itemsize = jnp.dtype(x3d.dtype).itemsize
    m = n * hw
    kernel = functools.partial(_bn_fused_kernel, inv_m=1.0 / m, eps=float(eps))
    footprint = 4 * n * c * hw * itemsize + 2 * n * c * hw * 4
    return pl.pallas_call(
        kernel,
        out_shape=(jax.ShapeDtypeStruct((n, c, hw), x3d.dtype),
                   jax.ShapeDtypeStruct((c, 1), jnp.float32),
                   jax.ShapeDtypeStruct((c, 1), jnp.float32)),
        compiler_params=pltpu.CompilerParams(
            vmem_limit_bytes=_vmem_limit_bytes(footprint, cap)),
        cost_estimate=pl.CostEstimate(
            flops=int(5 * n * c * hw),
            transcendentals=int(c),
            bytes_accessed=int(2 * n * c * hw * itemsize)),
    )(x3d, g2, b2)


# ---------------------------------------------------------------------------
# Public forward
# ---------------------------------------------------------------------------
def batchnorm2d_forward(x, gamma, beta, running_mean, running_var,
                        eps=1e-5, momentum=0.9, rescale=True, training=True,
                        use_fused=None, _force_hw_tile=None):
    """BatchNorm2D forward (NCHW). Returns (out, new_running_mean, new_running_var)."""
    n, c, h, w = x.shape
    hw = h * w
    m = n * hw
    itemsize = jnp.dtype(x.dtype).itemsize
    cap = _vmem_capacity_bytes()

    x3d = x.reshape(n, c, hw)          # free: NCHW is contiguous in this layout
    # TODO(synk): for C < 8 (f32) / 16 (bf16), fold samples of N into the
    # sublane dim to avoid sublane-padding waste (irrelevant for YOLOv7 C>=32).

    if rescale:
        assert gamma.shape == (c,) and beta.shape == (c,)
        g = gamma.astype(jnp.float32)
        b = beta.astype(jnp.float32)
    else:
        g = jnp.ones((c,), jnp.float32)
        b = jnp.zeros((c,), jnp.float32)
    g2 = g.reshape(c, 1)
    b2 = b.reshape(c, 1)
    eps32 = jnp.float32(eps)

    # Generation-aware per-kernel block budgets (v7x: 64 MiB VMEM; v5e/v6e: 128).
    stats_block_bytes = min(cap // 10, 12 << 20)   # streams x only (3 buffers)
    norm_block_bytes = min(cap // 16, 6 << 20)     # in + out, double-buffered

    if training:
        io_bytes = n * c * hw * itemsize
        fused_footprint = 4 * io_bytes + 2 * n * c * hw * 4
        if use_fused is None:
            use_fused = fused_footprint <= min((cap * 5) // 8, 72 << 20)
        if use_fused:
            out3d, mean2, var2 = _batchnorm_fused(x3d, g2, b2, eps, cap)
            mean, var = mean2[:, 0], var2[:, 0]
        else:
            t_stats = _force_hw_tile or _pick_hw_tile(hw, c, itemsize,
                                                      stats_block_bytes)
            psum, psq = _batchnorm_stats(x3d, t_stats, cap)
            # tiny (N, n_tiles, C, 1) -> (C, 1) combine + scale/shift fold (JAX glue)
            s = jnp.sum(psum, axis=(0, 1))
            sq = jnp.sum(psq, axis=(0, 1))
            mean2 = s / m
            var2 = jnp.maximum(sq / m - mean2 * mean2, 0.0)   # biased, clamped
            scale = g2 * jax.lax.rsqrt(var2 + eps32)
            shift = b2 - mean2 * scale
            t_norm = _force_hw_tile or _pick_hw_tile(hw, c, itemsize,
                                                     norm_block_bytes)
            out3d = _batchnorm_normalize(x3d, scale, shift, t_norm, cap)
            mean, var = mean2[:, 0], var2[:, 0]
        # running-stat buffer update (matches .mul_(momentum).add_((1-m)*stat))
        new_rm = momentum * running_mean + (1.0 - momentum) * mean
        new_rv = momentum * running_var + (1.0 - momentum) * var
    else:
        rm = running_mean.astype(jnp.float32).reshape(c, 1)
        rv = running_var.astype(jnp.float32).reshape(c, 1)
        scale = g2 * jax.lax.rsqrt((m / (m - 1.0)) * rv + eps32)
        shift = b2 - rm * scale
        t_norm = _force_hw_tile or _pick_hw_tile(hw, c, itemsize,
                                                 norm_block_bytes)
        out3d = _batchnorm_normalize(x3d, scale, shift, t_norm, cap)
        new_rm, new_rv = running_mean, running_var

    return out3d.reshape(n, c, h, w), new_rm, new_rv


# ---------------------------------------------------------------------------
# References + self-test
# ---------------------------------------------------------------------------
def _train_reference(x, gamma, beta, eps):
    mean = jnp.mean(x, axis=(0, 2, 3))
    var = jnp.var(x, axis=(0, 2, 3))
    xh = (x - mean[None, :, None, None]) / jnp.sqrt(
        var[None, :, None, None] + eps)
    return (gamma[None, :, None, None] * xh + beta[None, :, None, None],
            mean, var)


def _eval_reference(x, gamma, beta, rm, rv, eps):
    m = x.shape[0] * x.shape[2] * x.shape[3]
    xh = (x - rm[None, :, None, None]) / jnp.sqrt(
        (m / (m - 1.0)) * rv[None, :, None, None] + eps)
    return gamma[None, :, None, None] * xh + beta[None, :, None, None]


if __name__ == "__main__":
    key = jax.random.PRNGKey(0)
    k1, k2 = jax.random.split(key)
    eps, momentum = 1e-5, 0.9

    # ---- Case 1: small activation -> fused single-pass path ---------------
    N, C, H, W = 2, 4, 16, 16
    x = jax.random.normal(k1, (N, C, H, W), jnp.float32) * 2.0 + 0.5
    gamma = 1.0 + 0.1 * jnp.arange(C, dtype=jnp.float32)
    beta = 0.05 * jnp.arange(C, dtype=jnp.float32)
    rm0 = jnp.zeros((C,), jnp.float32)
    rv0 = jnp.ones((C,), jnp.float32)

    out, rm, rv = batchnorm2d_forward(x, gamma, beta, rm0, rv0, eps=eps,
                                      momentum=momentum, training=True)
    jax.block_until_ready(out)
    ref, mean_ref, var_ref = _train_reference(x, gamma, beta, eps)
    assert jnp.allclose(out, ref, atol=1e-4, rtol=1e-4), "fused fwd mismatch"
    assert jnp.allclose(rm, momentum * rm0 + (1 - momentum) * mean_ref,
                        atol=1e-5), "fused running mean mismatch"
    assert jnp.allclose(rv, momentum * rv0 + (1 - momentum) * var_ref,
                        atol=1e-5), "fused running var mismatch"

    # ---- Case 2: tiled two-kernel path, H*W=400 (not a multiple of 128) ----
    N2, C2, H2, W2 = 2, 8, 20, 20
    x2 = jax.random.normal(k2, (N2, C2, H2, W2), jnp.float32) * 1.5 - 0.25
    gamma2 = 1.0 + 0.05 * jnp.arange(C2, dtype=jnp.float32)
    beta2 = -0.1 + 0.02 * jnp.arange(C2, dtype=jnp.float32)
    rm20 = jnp.zeros((C2,), jnp.float32)
    rv20 = jnp.ones((C2,), jnp.float32)
    out2, rm2, rv2 = batchnorm2d_forward(
        x2, gamma2, beta2, rm20, rv20, eps=eps, momentum=momentum,
        training=True, use_fused=False, _force_hw_tile=128)
    jax.block_until_ready(out2)
    ref2, mean2_ref, var2_ref = _train_reference(x2, gamma2, beta2, eps)
    assert jnp.allclose(out2, ref2, atol=1e-4, rtol=1e-4), "tiled fwd mismatch"
    assert jnp.allclose(rm2, momentum * rm20 + (1 - momentum) * mean2_ref,
                        atol=1e-5), "tiled running mean mismatch"
    assert jnp.allclose(rv2, momentum * rv20 + (1 - momentum) * var2_ref,
                        atol=1e-5), "tiled running var mismatch"

    # ---- Case 3: eval mode (normalize kernel only, running stats) ----------
    rme = 0.3 * jnp.arange(C, dtype=jnp.float32)
    rve = 0.5 + 0.1 * jnp.arange(C, dtype=jnp.float32)
    out3, _, _ = batchnorm2d_forward(x, gamma, beta, rme, rve, eps=eps,
                                     momentum=momentum, training=False)
    jax.block_until_ready(out3)
    ref3 = _eval_reference(x, gamma, beta, rme, rve, eps)
    assert jnp.allclose(out3, ref3, atol=1e-4, rtol=1e-4), "eval fwd mismatch"

    print("KERNEL_OK")
</pallas_src>

<mosaic_0001>
module attributes {stable_mosaic.version = 11 : i64} {
  func.func @_bn_fused_kernel(%arg0: memref<2x4x256xf32, #tpu.memory_space<vmem>>, %arg1: memref<4x1xf32, #tpu.memory_space<vmem>>, %arg2: memref<4x1xf32, #tpu.memory_space<vmem>>, %arg3: memref<2x4x256xf32, #tpu.memory_space<vmem>>, %arg4: memref<4x1xf32, #tpu.memory_space<vmem>>, %arg5: memref<4x1xf32, #tpu.memory_space<vmem>>) attributes {dimension_semantics = [], scalar_prefetch = 0 : i64, scratch_operands = 0 : i64, tpu.core_type = #tpu.core_type<tc>} {
    %c0 = arith.constant 0 : index
    %c0_0 = arith.constant 0 : index
    %c0_1 = arith.constant 0 : index
    %0 = vector.load %arg0[%c0, %c0_0, %c0_1] : memref<2x4x256xf32, #tpu.memory_space<vmem>>, vector<2x4x256xf32>
    %cst = arith.constant dense<0.000000e+00> : vector<2x4xf32>
    %1 = vector.multi_reduction <add>, %0, %cst [2] : vector<2x4x256xf32> to vector<2x4xf32>
    %2 = vector.shape_cast %1 : vector<2x4xf32> to vector<2x4x1xf32>
    %cst_2 = arith.constant dense<0.000000e+00> : vector<4x1xf32>
    %3 = vector.multi_reduction <add>, %2, %cst_2 [0] : vector<2x4x1xf32> to vector<4x1xf32>
    %4 = arith.mulf %0, %0 : vector<2x4x256xf32>
    %cst_3 = arith.constant dense<0.000000e+00> : vector<2x4xf32>
    %5 = vector.multi_reduction <add>, %4, %cst_3 [2] : vector<2x4x256xf32> to vector<2x4xf32>
    %6 = vector.shape_cast %5 : vector<2x4xf32> to vector<2x4x1xf32>
    %cst_4 = arith.constant dense<0.000000e+00> : vector<4x1xf32>
    %7 = vector.multi_reduction <add>, %6, %cst_4 [0] : vector<2x4x1xf32> to vector<4x1xf32>
    %cst_5 = arith.constant 0.001953125 : f32
    %8 = vector.broadcast %cst_5 : f32 to vector<4x1xf32>
    %9 = arith.mulf %3, %8 : vector<4x1xf32>
    %cst_6 = arith.constant 0.001953125 : f32
    %10 = vector.broadcast %cst_6 : f32 to vector<4x1xf32>
    %11 = arith.mulf %7, %10 : vector<4x1xf32>
    %12 = arith.mulf %9, %9 : vector<4x1xf32>
    %13 = arith.subf %11, %12 : vector<4x1xf32>
    %cst_7 = arith.constant 0.000000e+00 : f32
    %14 = vector.broadcast %cst_7 : f32 to vector<4x1xf32>
    %15 = arith.maximumf %13, %14 : vector<4x1xf32>
    %c0_8 = arith.constant 0 : index
    %c0_9 = arith.constant 0 : index
    %16 = vector.load %arg4[%c0_8, %c0_9] : memref<4x1xf32, #tpu.memory_space<vmem>>, vector<4x1xf32>
    tpu.vector_store %arg4[%c0_8, %c0_9], %9 {strides = array<i32>} : memref<4x1xf32, #tpu.memory_space<vmem>>, vector<4x1xf32>,
    %c0_10 = arith.constant 0 : index
    %c0_11 = arith.constant 0 : index
    %17 = vector.load %arg5[%c0_10, %c0_11] : memref<4x1xf32, #tpu.memory_space<vmem>>, vector<4x1xf32>
    tpu.vector_store %arg5[%c0_10, %c0_11], %15 {strides = array<i32>} : memref<4x1xf32, #tpu.memory_space<vmem>>, vector<4x1xf32>,
    %c0_12 = arith.constant 0 : index
    %c0_13 = arith.constant 0 : index
    %18 = vector.load %arg1[%c0_12, %c0_13] : memref<4x1xf32, #tpu.memory_space<vmem>>, vector<4x1xf32>
    %cst_14 = arith.constant 9.99999974E-6 : f32
    %19 = vector.broadcast %cst_14 : f32 to vector<4x1xf32>
    %20 = arith.addf %15, %19 : vector<4x1xf32>
    %21 = math.rsqrt %20 : vector<4x1xf32>
    %22 = arith.mulf %18, %21 : vector<4x1xf32>
    %c0_15 = arith.constant 0 : index
    %c0_16 = arith.constant 0 : index
    %23 = vector.load %arg2[%c0_15, %c0_16] : memref<4x1xf32, #tpu.memory_space<vmem>>, vector<4x1xf32>
    %24 = arith.mulf %9, %22 : vector<4x1xf32>
    %25 = arith.subf %23, %24 : vector<4x1xf32>
    %26 = vector.shape_cast %22 : vector<4x1xf32> to vector<1x4x1xf32>
    %27 = vector.broadcast %26 : vector<1x4x1xf32> to vector<2x4x256xf32>
    %28 = arith.mulf %0, %27 : vector<2x4x256xf32>
    %29 = vector.shape_cast %25 : vector<4x1xf32> to vector<1x4x1xf32>
    %30 = vector.broadcast %29 : vector<1x4x1xf32> to vector<2x4x256xf32>
    %31 = arith.addf %28, %30 : vector<2x4x256xf32>
    %c0_17 = arith.constant 0 : index
    %c0_18 = arith.constant 0 : index
    %c0_19 = arith.constant 0 : index
    %32 = vector.load %arg3[%c0_17, %c0_18, %c0_19] : memref<2x4x256xf32, #tpu.memory_space<vmem>>, vector<2x4x256xf32>
    tpu.vector_store %arg3[%c0_17, %c0_18, %c0_19], %31 {strides = array<i32>} : memref<2x4x256xf32, #tpu.memory_space<vmem>>, vector<2x4x256xf32>,
    return
  }
}

</mosaic_0001>

<bundles_post_ra>
// kernel: tpu_custom_call.1
= control target key start
LH: loop header
LB: loop body
LE: loop exit
PB: predicated region body
PF: predicated region fallthrough
CT: control target
= control target key end

     0   :  { %11 = vsyncpa [#allocation3], 0  ;;  %s311_s0 = inlined_call_operand.hbm [shape: f32[2,4,256], index: 0, kind: input, shape index: {}]   ;;  %s312_s1 = inlined_call_operand.vmem [shape: f32[4,1], index: 1, kind: input, shape index: {}]   ;;  %s313_s2 = inlined_call_operand.vmem [shape: f32[4,1], index: 2, kind: input, shape index: {}]   ;;  %s314_s3 = inlined_call_operand.hbm [shape: f32[2,4,256], index: 3, kind: output, shape index: {0}]   ;;  %s315_s4 = inlined_call_operand.vmem [shape: f32[4,1], index: 4, kind: output, shape index: {1}]   ;;  %s316_s5 = inlined_call_operand.vmem [shape: f32[4,1], index: 5, kind: output, shape index: {2}]  }
   0x1   :  { %12 = vsyncpa [#allocation4], 0  ;;  %s205_s18 = smov [#allocation2]   ;;  %s157_s22 = scalar_lea.hbm %s311_s0, 256 }
   0x2   :  { %s18_s19 = sshll.u32 %s205_s18, 4  ;;  %p158_p0 = scmp.ne.s32.totalorder %s311_s0, %s157_s22  ;;  %s19_s19 = int_to_ptr.vmem [resolvable:$true] %s18_s19 }
   0x3   :  { %p161_p1 = scmp.lt.u32.totalorder %s157_s22, %s311_s0 }
   0x5   :  { %p163_p2 = pnand %p161_p1, %p158_p0 }
   0x7   :  { %166 = shalt.err (!%p163_p2)
}
   0x8   :  { %s167_s27 = scalar_lea.vmem %s19_s19, 256  ;;  %p172_p4 = scmp.lt.s32.totalorder %s19_s19, %s19_s19 }
   0x9   :  { %p168_p3 = scmp.ne.s32.totalorder %s19_s19, %s167_s27  ;;  %p173_p5 = scmp.lt.s32.totalorder %s167_s27, %s167_s27 }
   0xb   :  { %p174_p6 = por %p173_p5, %p172_p4 }
   0xd   :  { %p175_p7 = pnand %p174_p6, %p168_p3 }
   0xf   :  { %178 = shalt.err (!%p175_p7)
}
  0x10   :  { %s206_s28 = smov 128   ;;  %s207_s29 = smov 8  }
  0x11   :  { %24 = dma.hbm_to_vmem [thread:$0]  %s311_s0, 256, %s19_s19, [#allocation3], %s206_s28, %s206_s28, %s207_s29  }
  0x12   :  { %201 = dma.done.wait [#allocation3], 256  }
  0x13   :  { %202 = vsyncadd [#allocation3], 4294967040  ;;  %vm40_vm0 = vcmask 1043456   ;;  %v256_v0 = vld [vmem:[#allocation2] sm:$0xff]  ;;  %v258_v1 = vld [vmem:[#allocation2 + $0x8] sm:$0xff]  ;;  %v208_v20 = vmov 0   ;;  %v97_v45 = vlaneseq }
  0x14   :  { %v36_v2 = vcombine.high %v256_v0, %v256_v0  ;;  %v41_v3 = vsel %vm40_vm0, %v256_v0, 0.0  ;;  %v54_v4 = vmul.f32 %v256_v0, %v256_v0  ;;  %v37_v5 = vcombine.high %v258_v1, %v258_v1  ;;  %151 = vset.pattern.permute.xlu0 %v208_v20  ;;  %152 = vset.pattern.permute.xlu1 %v208_v20  ;;  %v83_v37 = vld [vmem:[%s312_s1] sm:$0xf]  ;;  %s210_s1 = smov [#allocation5]  }
  0x15   :  { %v46_v6 = vsel %vm40_vm0, %v258_v1, 0.0  ;;  %v55_v7 = vmul.f32 %v258_v1, %v258_v1  ;;  %vm80_vm1 = vcmask 3072   ;;  %v87_v40 = vld [vmem:[%s313_s2] sm:$0xf]  ;;  %v209_v43 = vmov 839922192  }
  0x16   :  { %v42_v8 = vsel %vm40_vm0, %v36_v2, 0.0  ;;  %v58_v9 = vcombine.high %v54_v4, %v54_v4  ;;  %v62_v10 = vsel %vm40_vm0, %v54_v4, 0.0  ;;  %v47_v11 = vsel %vm40_vm0, %v37_v5, 0.0 }
  0x17   :  { %v43_v12 = vadd.f32 %v42_v8, %v41_v3  ;;  %v59_v13 = vcombine.high %v55_v7, %v55_v7  ;;  %v67_v15 = vsel %vm40_vm0, %v55_v7, 0.0  ;;  %v48_v17 = vadd.f32 %v47_v11, %v46_v6 }
  0x18   :  { %v63_v14 = vsel %vm40_vm0, %v58_v9, 0.0  ;;  %v95_v44 = vunpack.c.l.s4 %v209_v43  ;;  %v98_v47 = vshrl.u32 %v97_v45, 7 }
  0x19   :  { %44 = vadd.xlane.f32.xlu0 %v43_v12  ;;  %v64_v16 = vadd.f32 %v63_v14, %v62_v10  ;;  %v68_v18 = vsel %vm40_vm0, %v59_v13, 0.0 }
  0x1a   :  { %v69_v19 = vadd.f32 %v68_v18, %v67_v15  ;;  %v96_v46 = vunpack.c.0.s8 %v95_v44 }
  0x1b   :  { %65 = vadd.xlane.f32.xlu1 %v64_v16 }
  0x1c   :  { %v99_v48 = vsub.s32 %v96_v46, %v98_v47 }
  0x1d   :  { %49 = vadd.xlane.f32.xlu0 %v48_v17 }
  0x1f   :  { %70 = vadd.xlane.f32.xlu1 %v69_v19 }
  0xa6   :  { %v45_v21 = vpop.xlane.xlu0 %44 }
  0xa7   :  { %v51_v24 = vsel %vm40_vm0, %v45_v21, 0.0 }
  0xa8   :  { %v66_v22 = vpop.xlane.xlu1 %65 }
  0xa9   :  { %v72_v28 = vsel %vm40_vm0, %v66_v22, 0.0 }
  0xaa   :  { %v50_v23 = vpop.xlane.xlu0 %49 }
  0xab   :  { %v52_v25 = vsel %vm40_vm0, %v50_v23, 0.0 }
  0xac   :  { %v53_v26 = vadd.f32 %v52_v25, %v51_v24  ;;  %v71_v27 = vpop.xlane.xlu1 %70 }
  0xad   :  { %v73_v29 = vsel %vm40_vm0, %v71_v27, 0.0 }
  0xae   :  { %v75_v30 = vmul.f32 0.001953125, %v53_v26  ;;  %v74_v31 = vadd.f32 %v73_v29, %v72_v28 }
  0xb0   :  { %81 = vst.msk [vmem:[%s315_s4] sm:$0xf] %vm80_vm1, %v75_v30  ;;  %v76_v32 = vmul.f32 0.001953125, %v74_v31  ;;  %v77_v33 = vmul.f32 %v75_v30, %v75_v30  ;;  %s125_s4 = sshll.u32 %s210_s1, 4  ;;  %s126_s4 = int_to_ptr.vmem [resolvable:$true] %s125_s4 }
  0xb1   :  { %s179_s2 = scalar_lea.vmem %s126_s4, 256  ;;  %p184_p9 = scmp.lt.s32.totalorder %s126_s4, %s126_s4 }
  0xb2   :  { %v78_v34 = vsub.f32 %v76_v32, %v77_v33  ;;  %p180_p8 = scmp.ne.s32.totalorder %s126_s4, %s179_s2  ;;  %p185_p10 = scmp.lt.s32.totalorder %s179_s2, %s179_s2 }
  0xb4   :  { %v79_v35 = vmax.f32 %v78_v34, 0.0  ;;  %p186_p11 = por %p185_p10, %p184_p9 }
  0xb6   :  { %82 = vst.msk [vmem:[%s316_s5] sm:$0xf] %vm80_vm1, %v79_v35  ;;  %v84_v36 = vadd.f32 1e-05, %v79_v35  ;;  %p187_p12 = pnand %p186_p11, %p180_p8 }
  0xb8   :  { %155 = vrsqrt.f32 %v84_v36 }
  0xc2   :  { %v156_v38 = vpop.eup %155 }
  0xc3   :  { %v86_v39 = vmul.f32 %v156_v38, %v83_v37 }
  0xc5   :  { %92 = vperm.xlu0 %151, %v86_v39   ;;  %v88_v41 = vmul.f32 %v86_v39, %v75_v30 }
  0xc7   :  { %v89_v42 = vsub.f32 %v87_v40, %v88_v41 }
  0xc9   :  { %106 = vperm.xlu1 %152, %v89_v42  }
 0x144   :  { %v93_v49 = vpop.permute.xlu0 %92 }
 0x145   :  { %v100_v50 = vrot.slane %v93_v49, %v99_v48 }
 0x147   :  { %v102_v52 = vmul.f32 %v100_v50, %v256_v0  ;;  %v103_v53 = vmul.f32 %v100_v50, %v258_v1 }
 0x148   :  { %v107_v51 = vpop.permute.xlu1 %106 }
 0x149   :  { %v114_v54 = vrot.slane %v107_v51, %v99_v48 }
 0x14b   :  { %v116_v55 = vadd.f32 %v114_v54, %v102_v52  ;;  %v117_v56 = vadd.f32 %v114_v54, %v103_v53 }
 0x14d   :  { %118 = vst [vmem:[#allocation5] sm:$0xff] %v116_v55  ;;  %119 = vst [vmem:[#allocation5 + $0x8] sm:$0xff] %v117_v56 }
 0x14e   :  { %190 = shalt.err (!%p187_p12)
}
 0x14f   :  { %s191_s15 = scalar_lea.hbm %s314_s3, 256 }
 0x150   :  { %p192_p13 = scmp.ne.s32.totalorder %s314_s3, %s191_s15  ;;  %p195_p0 = scmp.lt.u32.totalorder %s191_s15, %s314_s3 }
 0x152   :  { %p197_p1 = pnand %p195_p0, %p192_p13 }
 0x154   :  { %200 = shalt.err (!%p197_p1)
}
 0x155   :  { %131 = dma.vmem_to_hbm [thread:$0]  %s126_s4, 256, %s314_s3, [#allocation4], %s206_s28, %s206_s28, %s207_s29  }
 0x156   :  { %203 = dma.done.wait [#allocation4], 256  }
 0x157   :  { %204 = vsyncadd [#allocation4], 4294967040 }
 0x158   :  { %143 = vsyncpa [#allocation3], 1 }
 0x159   :  { %144 = vsyncpa [#allocation4], 1 }

</bundles_post_ra>
